<compile_context>
chip_gen: v6e
topology: v6e:2x2x1
jax: 0.10.0
libtpu: 0.0.40
codegen_flags: <defaults>
</compile_context>

<pallas_src>
import functools

import jax
import jax.numpy as jnp
from jax.experimental import pallas as pl
from jax.experimental.pallas import tpu as pltpu


def _round_up(v, m):
    return (v + m - 1) // m * m


def _pick_token_tile(tokens, tm):
    """Largest multiple-of-8 tile <= tm with < ~12.5% padded-token waste."""
    tm_eff = min(_round_up(tm, 8), _round_up(tokens, 8))
    while tm_eff > 8:
        tokens_p = _round_up(tokens, tm_eff)
        if (tokens_p - tokens) / tokens_p <= 0.125:
            break
        tm_eff = max(8, _round_up(tm_eff // 2, 8))
    return tm_eff


def _pick_out_tile(out_p, tn):
    """Largest multiple-of-128 tile <= tn that divides the padded out dim."""
    tn_eff = 128
    for cand in range(min(_round_up(tn, 128), out_p), 0, -128):
        if out_p % cand == 0:
            tn_eff = cand
            break
    return tn_eff


def prepare_qk_lora_params(w_org, b_org, w_down, w_up):
    """One-time parameter prep: transpose + zero-pad + bf16 cast.

    Hoisted out of the forward hot path so repeated forward calls do not
    re-materialize transposed/padded HBM copies of the weights.
    """
    out_dim, in_dim = w_org.shape
    lora_dim = w_down.shape[0]
    in_p = _round_up(in_dim, 128)
    lora_p = _round_up(lora_dim, 128)
    out_p = _round_up(out_dim, 128)

    def pad2(a, rows, cols, dtype):
        a = jnp.asarray(a, dtype)
        return jnp.pad(a, ((0, rows - a.shape[0]), (0, cols - a.shape[1])))

    return dict(
        w_org_t=pad2(jnp.asarray(w_org).T, in_p, out_p, jnp.bfloat16),
        w_down_t=pad2(jnp.asarray(w_down).T, in_p, lora_p, jnp.bfloat16),
        w_up_t=pad2(jnp.asarray(w_up).T, lora_p, out_p, jnp.bfloat16),
        b2d=pad2(jnp.asarray(b_org).reshape(1, -1), 1, out_p, jnp.float32),
        in_dim=in_dim, out_dim=out_dim, lora_dim=lora_dim,
        in_p=in_p, out_p=out_p, lora_p=lora_p,
    )


def _qk_lora_kernel(scale_ref,       # SMEM (1,) f32 (scalar prefetch)
                    x_ref,           # (tm, in_p)      bf16 VMEM
                    w_org_t_ref,     # (in_p, tn)      bf16 VMEM
                    b_org_ref,       # (1, tn)         f32  VMEM
                    w_down_t_ref,    # (in_p, lora_p)  bf16 VMEM (grid-invariant)
                    w_up_t_ref,      # (lora_p, tn)    bf16 VMEM
                    o_ref,           # (tm, tn)        VMEM
                    down_ref,        # (tm, lora_p)    bf16 VMEM scratch
                    *, multiplier):
    j = pl.program_id(1)

    # LoRA down-projection: computed once per token tile (j == 0), pre-scaled
    # by scale * multiplier (narrow tm x lora_p multiply instead of tm x tn),
    # and carried across the j ("arbitrary") axis in VMEM scratch.
    @pl.when(j == 0)
    def _():
        s = scale_ref[0] * multiplier
        down = jnp.dot(x_ref[...], w_down_t_ref[...],
                       preferred_element_type=jnp.float32)
        down_ref[...] = (down * s).astype(jnp.bfloat16)

    # Main projection + LoRA up-projection: bf16 operands, f32 MXU accumulation.
    h = jnp.dot(x_ref[...], w_org_t_ref[...], preferred_element_type=jnp.float32)
    delta = jnp.dot(down_ref[...], w_up_t_ref[...],
                    preferred_element_type=jnp.float32)
    o_ref[...] = (h + delta + b_org_ref[...]).astype(o_ref.dtype)


def qk_lora_forward(x, params, scale, multiplier=1.0,
                    tm=512, tn=256, out_dtype=jnp.bfloat16):
    """x: [tokens, in_dim]; params: output of prepare_qk_lora_params;
    scale: runtime scalar; multiplier: static float.
    tm=512 is a good default for v5e/v7x; use tm=1024 on v6e for large token
    counts to pass the MXU/HBM breakeven point.
    """
    tokens, in_dim = x.shape
    assert in_dim == params["in_dim"], "x feature dim mismatch"
    in_p, lora_p, out_p = params["in_p"], params["lora_p"], params["out_p"]
    out_dim = params["out_dim"]

    # ---- Tile geometry -------------------------------------------------------
    tm_eff = _pick_token_tile(tokens, tm)
    tokens_p = _round_up(tokens, tm_eff)
    tn_eff = _pick_out_tile(out_p, tn)

    # ---- Per-call glue: pad + cast activations only --------------------------
    x_p = jnp.pad(jnp.asarray(x, jnp.bfloat16),
                  ((0, tokens_p - tokens), (0, in_p - in_dim)))
    scale_arr = jnp.asarray(scale, jnp.float32).reshape(1)

    kernel = functools.partial(_qk_lora_kernel, multiplier=float(multiplier))
    grid = (tokens_p // tm_eff, out_p // tn_eff)

    # ---- VMEM budget: actual double-buffered footprint + margin --------------
    out_bytes = jnp.dtype(out_dtype).itemsize
    tile_bytes = (
        2 * tm_eff * in_p * 2            # x (bf16, double-buffered)
        + 2 * in_p * tn_eff * 2          # w_org_t
        + 2 * 8 * tn_eff * 4             # bias (sublane-padded f32)
        + 2 * in_p * lora_p * 2          # w_down_t (grid-invariant, DMA'd once)
        + 2 * lora_p * tn_eff * 2        # w_up_t
        + 2 * tm_eff * tn_eff * out_bytes  # output
        + tm_eff * lora_p * 2            # down scratch (single buffer)
    )
    vmem_limit = max(16 << 20, min(int(tile_bytes * 1.25) + (4 << 20), 112 << 20))

    # TODO(synk): for very large lora_dim (low_factor=1 with 4k+ hidden) the
    # full-width in_p contraction should additionally be K-tiled with an f32
    # accumulator; typical LoRA ranks fit comfortably as-is.
    grid_spec = pltpu.PrefetchScalarGridSpec(
        num_scalar_prefetch=1,                      # scale lives in SMEM
        grid=grid,
        in_specs=[
            pl.BlockSpec((tm_eff, in_p), lambda i, j, scale: (i, 0)),
            pl.BlockSpec((in_p, tn_eff), lambda i, j, scale: (0, j)),
            pl.BlockSpec((1, tn_eff), lambda i, j, scale: (0, j)),
            pl.BlockSpec((in_p, lora_p), lambda i, j, scale: (0, 0)),
            pl.BlockSpec((lora_p, tn_eff), lambda i, j, scale: (0, j)),
        ],
        out_specs=pl.BlockSpec((tm_eff, tn_eff), lambda i, j, scale: (i, j)),
        scratch_shapes=[pltpu.VMEM((tm_eff, lora_p), jnp.bfloat16)],
    )

    out_p_arr = pl.pallas_call(
        kernel,
        out_shape=jax.ShapeDtypeStruct((tokens_p, out_p), out_dtype),
        grid_spec=grid_spec,
        compiler_params=pltpu.CompilerParams(
            # i (tokens) parallel -> megacore sharding on v7x;
            # j (out_dim) arbitrary -> the down scratch carry is well defined.
            dimension_semantics=("parallel", "arbitrary"),
            vmem_limit_bytes=vmem_limit),
    )(scale_arr, x_p, params["w_org_t"], params["b2d"],
      params["w_down_t"], params["w_up_t"])

    # Strip the padding.
    return out_p_arr[:tokens, :out_dim]


if __name__ == "__main__":
    # Small shapes consistent with the module: batch=2, seq=8, hidden(in_dim)=32,
    # out_dim=32, low_factor=2 -> lora_dim = in_dim // 2 = 16.
    batch, seq, in_dim, out_dim = 2, 8, 32, 32
    low_factor = 2
    lora_dim = max(in_dim // low_factor, 1)
    multiplier = 1.0

    key = jax.random.PRNGKey(0)
    kx, kw, kb, kd, ku = jax.random.split(key, 5)

    x = jax.random.normal(kx, (batch, seq, in_dim), jnp.float32)

    # Deterministic parameter init (shapes per module __init__).
    w_org = jax.random.normal(kw, (out_dim, in_dim), jnp.float32) * 0.05
    b_org = jax.random.normal(kb, (out_dim,), jnp.float32) * 0.01
    # kaiming_uniform_(a=sqrt(5)) -> bound = 1/sqrt(in_dim)
    bound = 1.0 / (in_dim ** 0.5)
    w_down = jax.random.uniform(kd, (lora_dim, in_dim), jnp.float32, -bound, bound)
    # NOTE: PyTorch inits lora_up to zeros; use small nonzero values here so the
    # LoRA matmul path is actually exercised numerically.
    w_up = jax.random.normal(ku, (out_dim, lora_dim), jnp.float32) * 0.02
    scale = 1.0

    # One-time parameter preparation (hoisted out of the forward hot path).
    params = prepare_qk_lora_params(w_org, b_org, w_down, w_up)

    x2d = x.reshape(batch * seq, in_dim)            # layout: [tokens, in_dim]
    out2d = qk_lora_forward(x2d, params, scale, multiplier)
    out = out2d.reshape(batch, seq, out_dim)
    jax.block_until_ready(out)

    # Pure-JAX f32 reference.  Tolerance loosened for bf16 operands/output.
    h_ref = x @ w_org.T + b_org
    delta_ref = (x @ w_down.T) @ w_up.T
    ref = h_ref + delta_ref * scale * multiplier
    assert jnp.allclose(out.astype(jnp.float32), ref, atol=2e-2, rtol=2e-2), \
        "mismatch vs reference"

    print("KERNEL_OK")
</pallas_src>

<mosaic_0001>
module attributes {stable_mosaic.version = 11 : i64} {
  func.func @_qk_lora_kernel(%arg0: i32, %arg1: i32, %arg2: memref<1xf32, #tpu.memory_space<smem>>, %arg3: memref<16x128xbf16, #tpu.memory_space<vmem>>, %arg4: memref<128x128xbf16, #tpu.memory_space<vmem>>, %arg5: memref<1x128xf32, #tpu.memory_space<vmem>>, %arg6: memref<128x128xbf16, #tpu.memory_space<vmem>>, %arg7: memref<128x128xbf16, #tpu.memory_space<vmem>>, %arg8: memref<16x128xbf16, #tpu.memory_space<vmem>>, %arg9: memref<16x128xbf16, #tpu.memory_space<vmem>>) attributes {dimension_semantics = [#tpu.dimension_semantics<parallel>, #tpu.dimension_semantics<arbitrary>], iteration_bounds = array<i64: 1, 1>, scalar_prefetch = 1 : i64, scratch_operands = 1 : i64, tpu.core_type = #tpu.core_type<tc>, window_params = [{transform_indices = @transform_0, window_bounds = array<i64: 16, 128>}, {transform_indices = @transform_1, window_bounds = array<i64: 128, 128>}, {transform_indices = @transform_2, window_bounds = array<i64: 1, 128>}, {pipeline_mode = #tpu.pipeline_mode<synchronous>, transform_indices = @transform_3, window_bounds = array<i64: 128, 128>}, {transform_indices = @transform_4, window_bounds = array<i64: 128, 128>}, {transform_indices = @transform_5, window_bounds = array<i64: 16, 128>}]} {
    %c0_i32 = arith.constant 0 : i32
    %0 = arith.cmpi eq, %arg1, %c0_i32 : i32
    %1 = arith.extui %0 : i1 to i32
    %c0_i32_0 = arith.constant 0 : i32
    %2 = arith.cmpi ne, %1, %c0_i32_0 : i32
    scf.if %2 {
      %c0_13 = arith.constant 0 : index
      %15 = memref.load %arg2[%c0_13] : memref<1xf32, #tpu.memory_space<smem>>
      %cst_14 = arith.constant 1.000000e+00 : f32
      %16 = arith.mulf %15, %cst_14 : f32
      %c0_15 = arith.constant 0 : index
      %c0_16 = arith.constant 0 : index
      %17 = vector.load %arg3[%c0_15, %c0_16] : memref<16x128xbf16, #tpu.memory_space<vmem>>, vector<16x128xbf16>
      %c0_17 = arith.constant 0 : index
      %c0_18 = arith.constant 0 : index
      %18 = vector.load %arg6[%c0_17, %c0_18] : memref<128x128xbf16, #tpu.memory_space<vmem>>, vector<128x128xbf16>
      %cst_19 = arith.constant dense<0.000000e+00> : vector<16x128xf32>
      %19 = tpu.matmul %17, %18, %cst_19 {dimension_numbers = #tpu.dot_dimension_numbers<[1], [0], [0], [1], [0, 0, 1, 1], [], []>} : vector<16x128xbf16>, vector<128x128xbf16>, vector<16x128xf32> -> vector<16x128xf32>
      %20 = vector.broadcast %16 : f32 to vector<16x128xf32>
      %21 = arith.mulf %19, %20 : vector<16x128xf32>
      %22 = arith.truncf %21 : vector<16x128xf32> to vector<16x128xbf16>
      %c0_20 = arith.constant 0 : index
      %c0_21 = arith.constant 0 : index
      %23 = vector.load %arg9[%c0_20, %c0_21] : memref<16x128xbf16, #tpu.memory_space<vmem>>, vector<16x128xbf16>
      tpu.vector_store %arg9[%c0_20, %c0_21], %22 {strides = array<i32>} : memref<16x128xbf16, #tpu.memory_space<vmem>>, vector<16x128xbf16>,
    } else {
    }
    %c0 = arith.constant 0 : index
    %c0_1 = arith.constant 0 : index
    %3 = vector.load %arg3[%c0, %c0_1] : memref<16x128xbf16, #tpu.memory_space<vmem>>, vector<16x128xbf16>
    %c0_2 = arith.constant 0 : index
    %c0_3 = arith.constant 0 : index
    %4 = vector.load %arg4[%c0_2, %c0_3] : memref<128x128xbf16, #tpu.memory_space<vmem>>, vector<128x128xbf16>
    %cst = arith.constant dense<0.000000e+00> : vector<16x128xf32>
    %5 = tpu.matmul %3, %4, %cst {dimension_numbers = #tpu.dot_dimension_numbers<[1], [0], [0], [1], [0, 0, 1, 1], [], []>} : vector<16x128xbf16>, vector<128x128xbf16>, vector<16x128xf32> -> vector<16x128xf32>
    %c0_4 = arith.constant 0 : index
    %c0_5 = arith.constant 0 : index
    %6 = vector.load %arg9[%c0_4, %c0_5] : memref<16x128xbf16, #tpu.memory_space<vmem>>, vector<16x128xbf16>
    %c0_6 = arith.constant 0 : index
    %c0_7 = arith.constant 0 : index
    %7 = vector.load %arg7[%c0_6, %c0_7] : memref<128x128xbf16, #tpu.memory_space<vmem>>, vector<128x128xbf16>
    %cst_8 = arith.constant dense<0.000000e+00> : vector<16x128xf32>
    %8 = tpu.matmul %6, %7, %cst_8 {dimension_numbers = #tpu.dot_dimension_numbers<[1], [0], [0], [1], [0, 0, 1, 1], [], []>} : vector<16x128xbf16>, vector<128x128xbf16>, vector<16x128xf32> -> vector<16x128xf32>
    %9 = arith.addf %5, %8 : vector<16x128xf32>
    %c0_9 = arith.constant 0 : index
    %c0_10 = arith.constant 0 : index
    %10 = vector.load %arg5[%c0_9, %c0_10] : memref<1x128xf32, #tpu.memory_space<vmem>>, vector<1x128xf32>
    %11 = vector.broadcast %10 : vector<1x128xf32> to vector<16x128xf32>
    %12 = arith.addf %9, %11 : vector<16x128xf32>
    %13 = arith.truncf %12 : vector<16x128xf32> to vector<16x128xbf16>
    %c0_11 = arith.constant 0 : index
    %c0_12 = arith.constant 0 : index
    %14 = vector.load %arg8[%c0_11, %c0_12] : memref<16x128xbf16, #tpu.memory_space<vmem>>, vector<16x128xbf16>
    tpu.vector_store %arg8[%c0_11, %c0_12], %13 {strides = array<i32>} : memref<16x128xbf16, #tpu.memory_space<vmem>>, vector<16x128xbf16>,
    return
  }
  func.func @transform_0(%arg0: i32, %arg1: i32, %arg2: memref<1xf32, #tpu.memory_space<smem>>) -> (i32, i32) {
    %c0_i32 = arith.constant 0 : i32
    %c0_i32_0 = arith.constant 0 : i32
    return %arg0, %c0_i32 : i32, i32
  }
  func.func @transform_1(%arg0: i32, %arg1: i32, %arg2: memref<1xf32, #tpu.memory_space<smem>>) -> (i32, i32) {
    %c0_i32 = arith.constant 0 : i32
    %c0_i32_0 = arith.constant 0 : i32
    return %c0_i32, %arg1 : i32, i32
  }
  func.func @transform_2(%arg0: i32, %arg1: i32, %arg2: memref<1xf32, #tpu.memory_space<smem>>) -> (i32, i32) {
    %c0_i32 = arith.constant 0 : i32
    %c0_i32_0 = arith.constant 0 : i32
    return %c0_i32, %arg1 : i32, i32
  }
  func.func @transform_3(%arg0: i32, %arg1: i32, %arg2: memref<1xf32, #tpu.memory_space<smem>>) -> (i32, i32) {
    %c0_i32 = arith.constant 0 : i32
    %c0_i32_0 = arith.constant 0 : i32
    %c0_i32_1 = arith.constant 0 : i32
    return %c0_i32, %c0_i32_0 : i32, i32
  }
  func.func @transform_4(%arg0: i32, %arg1: i32, %arg2: memref<1xf32, #tpu.memory_space<smem>>) -> (i32, i32) {
    %c0_i32 = arith.constant 0 : i32
    %c0_i32_0 = arith.constant 0 : i32
    return %c0_i32, %arg1 : i32, i32
  }
  func.func @transform_5(%arg0: i32, %arg1: i32, %arg2: memref<1xf32, #tpu.memory_space<smem>>) -> (i32, i32) {
    %c0_i32 = arith.constant 0 : i32
    return %arg0, %arg1 : i32, i32
  }
}

</mosaic_0001>

<bundles_post_ra>
// kernel: tpu_custom_call.1
= control target key start
LH: loop header
LB: loop body
LE: loop exit
PB: predicated region body
PF: predicated region fallthrough
CT: control target
= control target key end

     0   :  { %12 = vsyncpa [#allocation6], 0  ;;  %s861_s0 = inlined_call_operand.<no memory space> [shape: f32[1], index: 0, kind: input, shape index: {}]   ;;  %s862_s1 = inlined_call_operand.hbm [shape: bf16[16,128], index: 1, kind: input, shape index: {}]   ;;  %s863_s2 = inlined_call_operand.hbm [shape: bf16[128,128], index: 2, kind: input, shape index: {}]   ;;  %s864_s3 = inlined_call_operand.vmem [shape: f32[1,128], index: 3, kind: input, shape index: {}]   ;;  %s865_s4 = inlined_call_operand.hbm [shape: bf16[128,128], index: 4, kind: input, shape index: {}]   ;;  %s866_s5 = inlined_call_operand.hbm [shape: bf16[128,128], index: 5, kind: input, shape index: {}]   ;;  %s867_s6 = inlined_call_operand.hbm [shape: bf16[16,128], index: 6, kind: output, shape index: {}]  }
   0x1   :  { %13 = vsyncpa [#allocation9], 0 }
   0x2   :  { %14 = vsyncpa [#allocation12], 0 }
   0x3   :  { %15 = vsyncpa [#allocation7], 0  ;;  %s751_s21 = smov [#allocation8]   ;;  %s752_s23 = smov [#allocation5]  }
   0x4   :  { %s33_s22 = sshll.u32 %s751_s21, 4  ;;  %s21_s24 = sshll.u32 %s752_s23, 4  ;;  %s34_s22 = int_to_ptr.vmem [resolvable:$true] %s33_s22  ;;  %s22_s24 = int_to_ptr.vmem [resolvable:$true] %s21_s24 }
   0x5   :  { %s651_s25 = scalar_lea.vmem %s34_s22, 1024  ;;  %p656_p1 = scmp.lt.s32.totalorder %s34_s22, %s34_s22 }
   0x6   :  { %p652_p0 = scmp.ne.s32.totalorder %s34_s22, %s651_s25  ;;  %p657_p2 = scmp.lt.s32.totalorder %s651_s25, %s651_s25 }
   0x8   :  { %p658_p3 = por %p657_p2, %p656_p1 }
   0xa   :  { %p659_p4 = pnand %p658_p3, %p652_p0 }
   0xc   :  { %662 = shalt.err (!%p659_p4)
}
   0xd   :  { %s753_s26 = smov 64   ;;  %s754_s27 = smov 4  }
   0xe   :  { %39 = dma.hbm_to_vmem [thread:$0]  %s863_s2, 1024, %s34_s22, [#allocation9], %s753_s26, %s753_s26, %s754_s27  }
   0xf   :  { %s671_s30 = scalar_lea.vmem %s22_s24, 128  ;;  %p676_p6 = scmp.lt.s32.totalorder %s22_s24, %s22_s24 }
  0x10   :  { %p672_p5 = scmp.ne.s32.totalorder %s22_s24, %s671_s30  ;;  %p677_p7 = scmp.lt.s32.totalorder %s671_s30, %s671_s30 }
  0x12   :  { %p678_p8 = por %p677_p7, %p676_p6 }
  0x14   :  { %p679_p9 = pnand %p678_p8, %p672_p5 }
  0x16   :  { %682 = shalt.err (!%p679_p9)
}
  0x17   :  { %27 = dma.hbm_to_vmem [thread:$0]  %s862_s1, 128, %s22_s24, [#allocation6], %s753_s26, %s753_s26, %s754_s27  }
  0x18   :  { %s755_s9 = smov [#allocation10]   ;;  %s756_s11 = smov [#allocation11]  }
  0x19   :  { %s47_s10 = sshll.u32 %s755_s9, 4  ;;  %s59_s12 = sshll.u32 %s756_s11, 4  ;;  %s48_s10 = int_to_ptr.vmem [resolvable:$true] %s47_s10  ;;  %s60_s12 = int_to_ptr.vmem [resolvable:$true] %s59_s12 }
  0x1a   :  { %s691_s2 = scalar_lea.vmem %s48_s10, 1024  ;;  %p696_p11 = scmp.lt.s32.totalorder %s48_s10, %s48_s10 }
  0x1b   :  { %p692_p10 = scmp.ne.s32.totalorder %s48_s10, %s691_s2  ;;  %p697_p12 = scmp.lt.s32.totalorder %s691_s2, %s691_s2 }
  0x1d   :  { %p698_p13 = por %p697_p12, %p696_p11 }
  0x1f   :  { %p699_p0 = pnand %p698_p13, %p692_p10 }
  0x21   :  { %702 = shalt.err (!%p699_p0)
}
  0x22   :  { %53 = dma.hbm_to_vmem [thread:$0]  %s865_s4, 1024, %s48_s10, [#allocation9], %s753_s26, %s753_s26, %s754_s27  }
  0x23   :  { %s711_s1 = scalar_lea.vmem %s60_s12, 1024  ;;  %p716_p2 = scmp.lt.s32.totalorder %s60_s12, %s60_s12 }
  0x24   :  { %p712_p1 = scmp.ne.s32.totalorder %s60_s12, %s711_s1  ;;  %p717_p3 = scmp.lt.s32.totalorder %s711_s1, %s711_s1 }
  0x26   :  { %p718_p4 = por %p717_p3, %p716_p2 }
  0x28   :  { %p719_p5 = pnand %p718_p4, %p712_p1 }
  0x2a   :  { %722 = shalt.err (!%p719_p5)
}
  0x2b   :  { %65 = dma.hbm_to_vmem [thread:$0]  %s866_s5, 1024, %s60_s12, [#allocation12], %s753_s26, %s753_s26, %s754_s27  }
  0x2c   :  { %743 = dma.done.wait [#allocation6], 128  }
  0x2d   :  { %744 = vsyncadd [#allocation6], 4294967168 }
  0x2e   :  { %745 = dma.done.wait [#allocation9], 2048  }
  0x2f   :  { %746 = vsyncadd [#allocation9], 4294965248 }
  0x30   :  { %747 = dma.done.wait [#allocation12], 1024  }
  0x31   :  { %748 = vsyncadd [#allocation12], 4294966272  ;;  %v757_v0 = vmov 0.0   ;;  %vm758_vm0 = vmmov 0   ;;  %v616_v1 = vld [vmem:[#allocation10 + $0x38] sm:$0xff]   ;;  %v617_v2 = vld [vmem:[#allocation10 + $0x30] sm:$0xff]   ;;  %v197_v28 = vstv %s861_s0 }
  0x32   :  { %547 = vmatprep.subr.bf16.mxu0 %v757_v0  ;;  %563 = vmatprep.mubr.msk.bf16.mxu0 %vm758_vm0, %v757_v0  ;;  %v618_v3 = vld [vmem:[#allocation10 + $0x28] sm:$0xff]   ;;  %v619_v4 = vld [vmem:[#allocation10 + $0x20] sm:$0xff]   ;;  %v627_v5 = vld [vmem:[#allocation11 + $0x38] sm:$0xff]   ;;  %s759_s0 = smov [#allocation13]  }
  0x33   :  { %567 = vmatprep.subr.bf16.mxu1 %v757_v0  ;;  %583 = vmatprep.mubr.msk.bf16.mxu1 %vm758_vm0, %v757_v0  ;;  %v629_v6 = vld [vmem:[#allocation11 + $0x30] sm:$0xff]   ;;  %v620_v7 = vld [vmem:[#allocation10 + $0x18] sm:$0xff]   ;;  %v631_v9 = vld [vmem:[#allocation11 + $0x28] sm:$0xff]   ;;  %s460_s19 = sshll.u32 %s759_s0, 4  ;;  %s461_s19 = int_to_ptr.vmem [resolvable:$true] %s460_s19 }
  0x34   :  { %548 = vmatpush3.bf16.msra.mxu0 %v616_v1  ;;  %568 = vmatpush3.bf16.msra.mxu1 %v627_v5  ;;  %v621_v8 = vld [vmem:[#allocation10 + $0x10] sm:$0xff]   ;;  %v622_v10 = vld [vmem:[#allocation10 + $0x8] sm:$0xff]   ;;  %v623_v11 = vld [vmem:[#allocation10] sm:$0xff]   ;;  %s723_s20 = scalar_lea.vmem %s461_s19, 128  ;;  %p728_p7 = scmp.lt.s32.totalorder %s461_s19, %s461_s19 }
  0x35   :  { %549 = vmatprep.subr.bf16.mxu0 %v757_v0  ;;  %569 = vmatprep.subr.bf16.mxu1 %v757_v0  ;;  %v624_v12 = vld [vmem:[#allocation5] sm:$0xff]   ;;  %v626_v14 = vld [vmem:[#allocation8 + $0x30] sm:$0xff]   ;;  %v628_v15 = vld [vmem:[#allocation8 + $0x28] sm:$0xff]   ;;  %p724_p6 = scmp.ne.s32.totalorder %s461_s19, %s723_s20  ;;  %p729_p8 = scmp.lt.s32.totalorder %s723_s20, %s723_s20 }
  0x36   :  { %v625_v13 = vld [vmem:[#allocation8 + $0x38] sm:$0xff]   ;;  %v630_v16 = vld [vmem:[#allocation8 + $0x20] sm:$0xff]   ;;  %v634_v19 = vld [vmem:[#allocation8 + $0x10] sm:$0xff]  }
  0x37   :  { %v632_v17 = vld [vmem:[#allocation8 + $0x18] sm:$0xff]   ;;  %v633_v18 = vld [vmem:[#allocation11 + $0x20] sm:$0xff]   ;;  %v636_v21 = vld [vmem:[#allocation8 + $0x8] sm:$0xff]   ;;  %p730_p9 = por %p729_p8, %p728_p7 }
  0x38   :  { %550 = vmatpush3.bf16.msra.mxu0 %v617_v2  ;;  %570 = vmatpush3.bf16.msra.mxu1 %v629_v6  ;;  %v635_v20 = vld [vmem:[#allocation11 + $0x18] sm:$0xff]   ;;  %v637_v22 = vld [vmem:[#allocation11 + $0x10] sm:$0xff]   ;;  %v638_v23 = vld [vmem:[#allocation8] sm:$0xff]  }
  0x39   :  { %551 = vmatprep.subr.bf16.mxu0 %v757_v0  ;;  %571 = vmatprep.subr.bf16.mxu1 %v757_v0  ;;  %v639_v24 = vld [vmem:[#allocation11 + $0x8] sm:$0xff]   ;;  %v640_v25 = vld [vmem:[#allocation5] sm:$0xff]   ;;  %v641_v26 = vld [vmem:[#allocation11] sm:$0xff]   ;;  %p731_p10 = pnand %p730_p9, %p724_p6 }
  0x3a   :  { %v503_v43 = vld [vmem:[%s864_s3] ss:$0 sm:$0xff] }
  0x3c   :  { %552 = vmatpush3.bf16.msra.mxu0 %v618_v3  ;;  %572 = vmatpush3.bf16.msra.mxu1 %v631_v9 }
  0x3d   :  { %553 = vmatprep.subr.bf16.mxu0 %v757_v0  ;;  %573 = vmatprep.subr.bf16.mxu1 %v757_v0 }
  0x40   :  { %554 = vmatpush3.bf16.msra.mxu0 %v619_v4  ;;  %574 = vmatpush3.bf16.msra.mxu1 %v633_v18 }
  0x41   :  { %555 = vmatprep.subr.bf16.mxu0 %v757_v0  ;;  %575 = vmatprep.subr.bf16.mxu1 %v757_v0 }
  0x44   :  { %556 = vmatpush3.bf16.msra.mxu0 %v620_v7  ;;  %576 = vmatpush3.bf16.msra.mxu1 %v635_v20 }
  0x45   :  { %557 = vmatprep.subr.bf16.mxu0 %v757_v0  ;;  %577 = vmatprep.subr.bf16.mxu1 %v757_v0 }
  0x48   :  { %558 = vmatpush3.bf16.msra.mxu0 %v621_v8  ;;  %578 = vmatpush3.bf16.msra.mxu1 %v637_v22 }
  0x49   :  { %559 = vmatprep.subr.bf16.mxu0 %v757_v0  ;;  %579 = vmatprep.subr.bf16.mxu1 %v757_v0 }
  0x4c   :  { %560 = vmatpush3.bf16.msra.mxu0 %v622_v10  ;;  %580 = vmatpush3.bf16.msra.mxu1 %v639_v24 }
  0x4d   :  { %561 = vmatprep.subr.bf16.mxu0 %v757_v0  ;;  %581 = vmatprep.subr.bf16.mxu1 %v757_v0 }
  0x50   :  { %562 = vmatpush3.bf16.msra.mxu0 %v623_v11  ;;  %582 = vmatpush3.bf16.msra.mxu1 %v641_v26 }
  0x51   :  { %587 = vmatprep.subr.bf16.mxu0 %v757_v0 }
  0x53   :  { %564 = vmatmul.mubr.bf16.vlgmr.msra.gmra.mxu0 %v624_v12 }
  0x54   :  { %588 = vmatpush3.bf16.msra.mxu0 %v625_v13  ;;  %603 = vmatprep.mubr.msk.bf16.mxu0 %vm758_vm0, %v757_v0 }
  0x55   :  { %589 = vmatprep.subr.bf16.mxu0 %v757_v0 }
  0x58   :  { %590 = vmatpush3.bf16.msra.mxu0 %v626_v14 }
  0x59   :  { %591 = vmatprep.subr.bf16.mxu0 %v757_v0 }
  0x5c   :  { %592 = vmatpush3.bf16.msra.mxu0 %v628_v15 }
  0x5d   :  { %593 = vmatprep.subr.bf16.mxu0 %v757_v0 }
  0x60   :  { %594 = vmatpush3.bf16.msra.mxu0 %v630_v16 }
  0x61   :  { %595 = vmatprep.subr.bf16.mxu0 %v757_v0 }
  0x64   :  { %596 = vmatpush3.bf16.msra.mxu0 %v632_v17 }
  0x65   :  { %597 = vmatprep.subr.bf16.mxu0 %v757_v0 }
  0x68   :  { %598 = vmatpush3.bf16.msra.mxu0 %v634_v19 }
  0x69   :  { %599 = vmatprep.subr.bf16.mxu0 %v757_v0 }
  0x6c   :  { %600 = vmatpush3.bf16.msra.mxu0 %v636_v21 }
  0x6d   :  { %601 = vmatprep.subr.bf16.mxu0 %v757_v0 }
  0x70   :  { %602 = vmatpush3.bf16.msra.mxu0 %v638_v23 }
  0x73   :  { %604 = vmatmul.mubr.bf16.vlgmr.msra.gmra.mxu0 %v640_v25 }
 0x113   :  { %v190_v27 = vpop.f32.mrf.mxu0 }
 0x114   :  { %v198_v31 = vmul.f32 %v197_v28, %v190_v27 }
 0x115   :  { %v565_v29 = vpop.f32.mrf.mxu0 }
 0x117   :  { %v193_v30 = vpop.f32.mrf.mxu0 }
 0x118   :  { %v199_v32 = vmul.f32 %v197_v28, %v193_v30 }
 0x119   :  { %v566_v33 = vpop.f32.mrf.mxu0 }
 0x11a   :  { %v513_v34 = vpack.c.bf16 %v199_v32, %v198_v31 }
 0x11c   :  { %514 = vst [vmem:[#allocation2] sm:$0xff] %v513_v34  }
 0x123   :  { %v642_v35 = vld [vmem:[#allocation2] sm:$0xff]  }
 0x124   :  { %584 = vmatmul.mubr.bf16.vlgmr.msra.gmra.mxu1 %v642_v35 }
 0x133   :  { %v429_v36 = vpop.f32.mrf.mxu0 }
 0x135   :  { %v605_v37 = vpop.f32.mrf.mxu0 }
 0x137   :  { %v432_v38 = vpop.f32.mrf.mxu0 }
 0x139   :  { %v606_v39 = vpop.f32.mrf.mxu0 }
 0x1e4   :  { %v334_v40 = vpop.f32.mrf.mxu1 }
 0x1e5   :  { %v430_v42 = vadd.f32 %v429_v36, %v334_v40 }
 0x1e6   :  { %v585_v41 = vpop.f32.mrf.mxu1 }
 0x1e7   :  { %v443_v47 = vadd.f32 %v503_v43, %v430_v42 }
 0x1e8   :  { %v337_v44 = vpop.f32.mrf.mxu1 }
 0x1e9   :  { %v433_v45 = vadd.f32 %v432_v38, %v337_v44 }
 0x1ea   :  { %v586_v46 = vpop.f32.mrf.mxu1 }
 0x1eb   :  { %v444_v48 = vadd.f32 %v503_v43, %v433_v45 }
 0x1ed   :  { %v518_v49 = vpack.c.bf16 %v444_v48, %v443_v47 }
 0x1ef   :  { %519 = vst [vmem:[#allocation13] sm:$0xff] %v518_v49  }
 0x1f0   :  { %734 = shalt.err (!%p731_p10)
}
 0x1f1   :  { %466 = dma.vmem_to_hbm [thread:$0]  %s461_s19, 128, %s867_s6, [#allocation7], %s753_s26, %s753_s26, %s754_s27  }
 0x1f2   :  { %749 = dma.done.wait [#allocation7], 128  }
 0x1f3   :  { %750 = vsyncadd [#allocation7], 4294967168 }
 0x1f4   :  { %470 = vsyncpa [#allocation6], 1 }
 0x1f5   :  { %471 = vsyncpa [#allocation9], 1 }
 0x1f6   :  { %472 = vsyncpa [#allocation12], 1 }
 0x1f7   :  { %473 = vsyncpa [#allocation7], 1 }

</bundles_post_ra>
